<compile_context>
chip_gen: v5e
topology: v5e:2x2
jax: 0.10.0
libtpu: 0.0.40
codegen_flags: <defaults>
</compile_context>

<pallas_src>
import functools
import math

import jax
import jax.numpy as jnp
from jax.experimental import pallas as pl
from jax.experimental.pallas import tpu as pltpu


def _round_up(x: int, m: int) -> int:
    return ((x + m - 1) // m) * m


def _sigmoid(z):
    # exp goes to the EUP (separate bundle slot); add/div to the VPU.
    return 1.0 / (1.0 + jnp.exp(-z))


def _nalu_kernel(x_ref, w_hat_ref, m_hat_ref, g_w_ref, o_ref, *, eps: float):
    # x_ref:     (Bblk, INp)       activation tile
    # w_hat_ref: (INp,  Nblk)      pre-transposed W_hat slice
    # m_hat_ref: (INp,  Nblk)      pre-transposed M_hat slice
    # g_w_ref:   (INp,  Nblk)      pre-transposed G slice
    # o_ref:     (Bblk, Nblk)
    x = x_ref[...]

    # NAC weight (VPU + EUP, overlaps with MXU work).
    w = jnp.tanh(w_hat_ref[...]) * _sigmoid(m_hat_ref[...])

    # Additive path: a = x @ W^T  (weights already transposed -> plain dot on MXU).
    a = jnp.dot(x, w, preferred_element_type=jnp.float32)

    # Gate: g = sigmoid(x @ G^T).
    g = _sigmoid(jnp.dot(x, g_w_ref[...], preferred_element_type=jnp.float32))

    # Multiplicative path: m = exp(log(|x| + eps) @ W^T).
    log_x = jnp.log(jnp.abs(x) + eps)
    m = jnp.exp(jnp.dot(log_x, w, preferred_element_type=jnp.float32))

    o_ref[...] = (g * a + (1.0 - g) * m).astype(o_ref.dtype)


def nalu_forward(x, w_hat, m_hat, g_weight, *, eps: float = 1e-10):
    """NALU cell forward: x [B, in_dim] -> y [B, out_dim]."""
    batch, in_dim = x.shape
    out_dim = w_hat.shape[0]

    # --- padded, hardware-friendly sizes -------------------------------------
    in_p = _round_up(in_dim, 128)
    out_p = _round_up(out_dim, 128)

    b8 = _round_up(max(batch, 8), 8)
    block_b = min(b8, 256)                   # batch tile (grid axis 0)
    b_p = _round_up(b8, block_b)

    # output tile (grid axis 1): biggest lane-dense divisor of out_p <= 512
    if out_p <= 512:
        block_n = out_p
    elif out_p % 512 == 0:
        block_n = 512
    elif out_p % 256 == 0:
        block_n = 256
    else:
        block_n = 128

    # --- zero-pad once in the wrapper (inert, see header) --------------------
    x_p = jnp.pad(x.astype(jnp.float32), ((0, b_p - batch), (0, in_p - in_dim)))

    def prep_w(w):  # [out_dim, in_dim] -> padded, transposed [in_p, out_p]
        return jnp.pad(w.astype(jnp.float32).T,
                       ((0, in_p - in_dim), (0, out_p - out_dim)))

    w_hat_p = prep_w(w_hat)
    m_hat_p = prep_w(m_hat)
    g_w_p = prep_w(g_weight)

    grid = (b_p // block_b, out_p // block_n)

    cost = pl.CostEstimate(
        flops=6 * b_p * in_p * out_p,                                   # 3 matmuls
        transcendentals=2 * in_p * out_p + 2 * b_p * out_p + b_p * in_p,
        bytes_accessed=4 * (b_p * in_p + 3 * in_p * out_p + b_p * out_p),
    )

    kernel = functools.partial(_nalu_kernel, eps=eps)
    y_p = pl.pallas_call(
        kernel,
        out_shape=jax.ShapeDtypeStruct((b_p, out_p), jnp.float32),
        grid=grid,
        in_specs=[
            pl.BlockSpec((block_b, in_p), lambda i, j: (i, 0)),
            pl.BlockSpec((in_p, block_n), lambda i, j: (0, j)),
            pl.BlockSpec((in_p, block_n), lambda i, j: (0, j)),
            pl.BlockSpec((in_p, block_n), lambda i, j: (0, j)),
        ],
        out_specs=pl.BlockSpec((block_b, block_n), lambda i, j: (i, j)),
        compiler_params=pltpu.CompilerParams(
            dimension_semantics=("parallel", "parallel"),
        ),
        cost_estimate=cost,
    )(x_p, w_hat_p, m_hat_p, g_w_p)

    # Slice off the padding.
    return y_p[:batch, :out_dim].astype(x.dtype)


def init_nalu_params(key, in_dim, out_dim):
    """Matches PyTorch: kaiming_uniform_(a=sqrt(5)) -> bound = 1/sqrt(fan_in)."""
    bound = 1.0 / math.sqrt(in_dim)
    k_w, k_m, k_g = jax.random.split(key, 3)
    w_hat = jax.random.uniform(k_w, (out_dim, in_dim), jnp.float32, -bound, bound)
    m_hat = jax.random.uniform(k_m, (out_dim, in_dim), jnp.float32, -bound, bound)
    g = jax.random.uniform(k_g, (out_dim, in_dim), jnp.float32, -bound, bound)
    return w_hat, m_hat, g


if __name__ == "__main__":
    # Small shapes consistent with the module's forward: x is [batch, in_dim].
    in_dim, out_dim, batch = 16, 8, 4
    eps = 1e-10

    key = jax.random.PRNGKey(0)
    key, kx = jax.random.split(key)
    x = jax.random.normal(kx, (batch, in_dim), jnp.float32)
    w_hat, m_hat, g_w = init_nalu_params(key, in_dim, out_dim)

    y = nalu_forward(x, w_hat, m_hat, g_w, eps=eps)
    jax.block_until_ready(y)

    # Pure-JAX reference (same math, no Pallas).
    W = jnp.tanh(w_hat) * (1.0 / (1.0 + jnp.exp(-m_hat)))
    a_ref = x @ W.T
    g_ref = 1.0 / (1.0 + jnp.exp(-(x @ g_w.T)))
    m_ref = jnp.exp(jnp.log(jnp.abs(x) + eps) @ W.T)
    ref = g_ref * a_ref + (1.0 - g_ref) * m_ref

    assert y.shape == (batch, out_dim)
    assert jnp.allclose(y, ref, atol=1e-4, rtol=1e-4), float(jnp.max(jnp.abs(y - ref)))

    print("KERNEL_OK")
</pallas_src>

<mosaic_0001>
module attributes {stable_mosaic.version = 11 : i64} {
  func.func @_nalu_kernel(%arg0: i32, %arg1: i32, %arg2: memref<8x128xf32, #tpu.memory_space<vmem>>, %arg3: memref<128x128xf32, #tpu.memory_space<vmem>>, %arg4: memref<128x128xf32, #tpu.memory_space<vmem>>, %arg5: memref<128x128xf32, #tpu.memory_space<vmem>>, %arg6: memref<8x128xf32, #tpu.memory_space<vmem>>) attributes {dimension_semantics = [#tpu.dimension_semantics<parallel>, #tpu.dimension_semantics<parallel>], iteration_bounds = array<i64: 1, 1>, scalar_prefetch = 0 : i64, scratch_operands = 0 : i64, tpu.core_type = #tpu.core_type<tc>, window_params = [{transform_indices = @transform_0, window_bounds = array<i64: 8, 128>}, {transform_indices = @transform_1, window_bounds = array<i64: 128, 128>}, {transform_indices = @transform_2, window_bounds = array<i64: 128, 128>}, {transform_indices = @transform_3, window_bounds = array<i64: 128, 128>}, {transform_indices = @transform_4, window_bounds = array<i64: 8, 128>}]} {
    %c0 = arith.constant 0 : index
    %c0_0 = arith.constant 0 : index
    %0 = vector.load %arg2[%c0, %c0_0] : memref<8x128xf32, #tpu.memory_space<vmem>>, vector<8x128xf32>
    %c0_1 = arith.constant 0 : index
    %c0_2 = arith.constant 0 : index
    %1 = vector.load %arg3[%c0_1, %c0_2] : memref<128x128xf32, #tpu.memory_space<vmem>>, vector<128x128xf32>
    %2 = math.tanh %1 : vector<128x128xf32>
    %c0_3 = arith.constant 0 : index
    %c0_4 = arith.constant 0 : index
    %3 = vector.load %arg4[%c0_3, %c0_4] : memref<128x128xf32, #tpu.memory_space<vmem>>, vector<128x128xf32>
    %cst = arith.constant 0.000000e+00 : f32
    %4 = vector.broadcast %cst : f32 to vector<128x128xf32>
    %5 = arith.subf %4, %3 : vector<128x128xf32>
    %6 = math.exp %5 : vector<128x128xf32>
    %cst_5 = arith.constant 1.000000e+00 : f32
    %7 = vector.broadcast %cst_5 : f32 to vector<128x128xf32>
    %8 = arith.addf %7, %6 : vector<128x128xf32>
    %cst_6 = arith.constant 1.000000e+00 : f32
    %9 = vector.broadcast %cst_6 : f32 to vector<128x128xf32>
    %10 = arith.divf %9, %8 : vector<128x128xf32>
    %11 = arith.mulf %2, %10 : vector<128x128xf32>
    %cst_7 = arith.constant dense<0.000000e+00> : vector<8x128xf32>
    %12 = tpu.matmul %0, %11, %cst_7 {dimension_numbers = #tpu.dot_dimension_numbers<[1], [0], [0], [1], [0, 0, 1, 1], [], []>} : vector<8x128xf32>, vector<128x128xf32>, vector<8x128xf32> -> vector<8x128xf32>
    %c0_8 = arith.constant 0 : index
    %c0_9 = arith.constant 0 : index
    %13 = vector.load %arg5[%c0_8, %c0_9] : memref<128x128xf32, #tpu.memory_space<vmem>>, vector<128x128xf32>
    %cst_10 = arith.constant dense<0.000000e+00> : vector<8x128xf32>
    %14 = tpu.matmul %0, %13, %cst_10 {dimension_numbers = #tpu.dot_dimension_numbers<[1], [0], [0], [1], [0, 0, 1, 1], [], []>} : vector<8x128xf32>, vector<128x128xf32>, vector<8x128xf32> -> vector<8x128xf32>
    %cst_11 = arith.constant 0.000000e+00 : f32
    %15 = vector.broadcast %cst_11 : f32 to vector<8x128xf32>
    %16 = arith.subf %15, %14 : vector<8x128xf32>
    %17 = math.exp %16 : vector<8x128xf32>
    %cst_12 = arith.constant 1.000000e+00 : f32
    %18 = vector.broadcast %cst_12 : f32 to vector<8x128xf32>
    %19 = arith.addf %18, %17 : vector<8x128xf32>
    %cst_13 = arith.constant 1.000000e+00 : f32
    %20 = vector.broadcast %cst_13 : f32 to vector<8x128xf32>
    %21 = arith.divf %20, %19 : vector<8x128xf32>
    %22 = math.absf %0 : vector<8x128xf32>
    %cst_14 = arith.constant 1.000000e-10 : f32
    %23 = vector.broadcast %cst_14 : f32 to vector<8x128xf32>
    %24 = arith.addf %22, %23 : vector<8x128xf32>
    %25 = math.log %24 : vector<8x128xf32>
    %cst_15 = arith.constant dense<0.000000e+00> : vector<8x128xf32>
    %26 = tpu.matmul %25, %11, %cst_15 {dimension_numbers = #tpu.dot_dimension_numbers<[1], [0], [0], [1], [0, 0, 1, 1], [], []>} : vector<8x128xf32>, vector<128x128xf32>, vector<8x128xf32> -> vector<8x128xf32>
    %27 = math.exp %26 : vector<8x128xf32>
    %28 = arith.mulf %21, %12 : vector<8x128xf32>
    %cst_16 = arith.constant 1.000000e+00 : f32
    %29 = vector.broadcast %cst_16 : f32 to vector<8x128xf32>
    %30 = arith.subf %29, %21 : vector<8x128xf32>
    %31 = arith.mulf %30, %27 : vector<8x128xf32>
    %32 = arith.addf %28, %31 : vector<8x128xf32>
    %c0_17 = arith.constant 0 : index
    %c0_18 = arith.constant 0 : index
    %33 = vector.load %arg6[%c0_17, %c0_18] : memref<8x128xf32, #tpu.memory_space<vmem>>, vector<8x128xf32>
    tpu.vector_store %arg6[%c0_17, %c0_18], %32 {strides = array<i32>} : memref<8x128xf32, #tpu.memory_space<vmem>>, vector<8x128xf32>,
    return
  }
  func.func @transform_0(%arg0: i32, %arg1: i32) -> (i32, i32) {
    %c0_i32 = arith.constant 0 : i32
    %c0_i32_0 = arith.constant 0 : i32
    return %arg0, %c0_i32 : i32, i32
  }
  func.func @transform_1(%arg0: i32, %arg1: i32) -> (i32, i32) {
    %c0_i32 = arith.constant 0 : i32
    %c0_i32_0 = arith.constant 0 : i32
    return %c0_i32, %arg1 : i32, i32
  }
  func.func @transform_2(%arg0: i32, %arg1: i32) -> (i32, i32) {
    %c0_i32 = arith.constant 0 : i32
    %c0_i32_0 = arith.constant 0 : i32
    return %c0_i32, %arg1 : i32, i32
  }
  func.func @transform_3(%arg0: i32, %arg1: i32) -> (i32, i32) {
    %c0_i32 = arith.constant 0 : i32
    %c0_i32_0 = arith.constant 0 : i32
    return %c0_i32, %arg1 : i32, i32
  }
  func.func @transform_4(%arg0: i32, %arg1: i32) -> (i32, i32) {
    %c0_i32 = arith.constant 0 : i32
    return %arg0, %arg1 : i32, i32
  }
}

</mosaic_0001>

<bundles_post_ra>
// kernel: tpu_custom_call.1
= control target key start
LH: loop header
LB: loop body
LE: loop exit
PB: predicated region body
PF: predicated region fallthrough
CT: control target
= control target key end

     0   :  { %9 = vsyncpa [#allocation3], 0  ;;  %s1207_s0 = inlined_call_operand.hbm [shape: f32[8,128], index: 0, kind: input, shape index: {}]   ;;  %s1208_s1 = inlined_call_operand.hbm [shape: f32[128,128], index: 1, kind: input, shape index: {}]   ;;  %s1209_s2 = inlined_call_operand.hbm [shape: f32[128,128], index: 2, kind: input, shape index: {}]   ;;  %s1210_s3 = inlined_call_operand.hbm [shape: f32[128,128], index: 3, kind: input, shape index: {}]   ;;  %s1211_s4 = inlined_call_operand.hbm [shape: f32[8,128], index: 4, kind: output, shape index: {}]  }
   0x1   :  { %10 = vsyncpa [#allocation6], 0 }
   0x2   :  { %11 = vsyncpa [#allocation9], 0  ;;  %s28_s17 = sshll.u32 %s1208_s1, 4  ;;  %s29_s17 = int_to_ptr.hbm [resolvable:$true] %s28_s17 }
   0x3   :  { %12 = vsyncpa [#allocation4], 0  ;;  %s812_s18 = smov [#allocation5]   ;;  %s18_s22 = sshll.u32 %s1207_s0, 4  ;;  %s19_s22 = int_to_ptr.hbm [resolvable:$true] %s18_s22 }
   0x4   :  { %s30_s19 = sshll.u32 %s812_s18, 4  ;;  %s813_s23 = smov 128   ;;  %s31_s19 = int_to_ptr.vmem [resolvable:$true] %s30_s19 }
   0x5   :  { %s814_s24 = smov 8   ;;  %s815_s25 = smov [#allocation2]  }
   0x6   :  { %36 = dma.hbm_to_vmem [thread:$0]  %s29_s17, 2048, %s31_s19, [#allocation6], %s813_s23, %s813_s23, %s814_s24  }
   0x7   :  { %s20_s26 = sshll.u32 %s815_s25, 4  ;;  %s41_s29 = sshll.u32 %s1209_s2, 4  ;;  %s21_s26 = int_to_ptr.vmem [resolvable:$true] %s20_s26  ;;  %s42_s29 = int_to_ptr.hbm [resolvable:$true] %s41_s29 }
   0x8   :  { %23 = dma.hbm_to_vmem [thread:$0]  %s19_s22, 128, %s21_s26, [#allocation3]  }
   0x9   :  { %s54_s5 = sshll.u32 %s1210_s3, 4  ;;  %s816_s6 = smov [#allocation7]   ;;  %s55_s5 = int_to_ptr.hbm [resolvable:$true] %s54_s5 }
   0xa   :  { %s43_s7 = sshll.u32 %s816_s6, 4  ;;  %s817_s0 = smov [#allocation8]   ;;  %s44_s7 = int_to_ptr.vmem [resolvable:$true] %s43_s7 }
   0xb   :  { %49 = dma.hbm_to_vmem [thread:$0]  %s42_s29, 2048, %s44_s7, [#allocation6], %s813_s23, %s813_s23, %s814_s24  }
   0xc   :  { %s56_s8 = sshll.u32 %s817_s0, 4  ;;  %s57_s8 = int_to_ptr.vmem [resolvable:$true] %s56_s8 }
   0xd   :  { %62 = dma.hbm_to_vmem [thread:$0]  %s55_s5, 2048, %s57_s8, [#allocation9], %s813_s23, %s813_s23, %s814_s24  }
   0xe   :  { %804 = dma.done.wait [#allocation3], 128  }
   0xf   :  { %805 = vsyncadd [#allocation3], 4294967168 }
  0x10   :  { %806 = dma.done.wait [#allocation6], 4096  }
  0x11   :  { %807 = vsyncadd [#allocation6], 4294963200 }
  0x12   :  { %808 = dma.done.wait [#allocation9], 2048  }
  0x13   :  { %809 = vsyncadd [#allocation9], 4294965248  ;;  %v483_v0 = vld [vmem:[#allocation8 + $0x78] sm:$0xff]  ;;  %v482_v1 = vld [vmem:[#allocation8 + $0x70] sm:$0xff]  ;;  %s818_s2 = smov [#allocation10]   ;;  %s561_s11 = sshll.u32 %s1211_s4, 4  ;;  %s562_s11 = int_to_ptr.hbm [resolvable:$true] %s561_s11 }
  0x14   :  { %484 = vmatpush.msra.mxu1 %v483_v0  ;;  %v481_v2 = vld [vmem:[#allocation8 + $0x68] sm:$0xff]  ;;  %v480_v3 = vld [vmem:[#allocation8 + $0x60] sm:$0xff]  ;;  %v95_v4 = vld [vmem:[#allocation5 + $0x78] sm:$0xff]  ;;  %s559_s3 = sshll.u32 %s818_s2, 4  ;;  %s560_s3 = int_to_ptr.vmem [resolvable:$true] %s559_s3 }
  0x15   :  { %v127_v5 = vld [vmem:[#allocation7 + $0x78] sm:$0xff]  ;;  %v94_v8 = vld [vmem:[#allocation5 + $0x70] sm:$0xff]  ;;  %580 = vtanh.f32 %v95_v4  ;;  %v93_v11 = vld [vmem:[#allocation5 + $0x68] sm:$0xff] }
  0x16   :  { %485 = vmatpush.msra.mxu1 %v482_v1  ;;  %v479_v6 = vld [vmem:[#allocation8 + $0x58] sm:$0xff]  ;;  %v143_v7 = vsub.f32 0.0, %v127_v5  ;;  %v126_v9 = vld [vmem:[#allocation7 + $0x70] sm:$0xff]  ;;  %v125_v12 = vld [vmem:[#allocation7 + $0x68] sm:$0xff]  ;;  %582 = vtanh.f32 %v94_v8 }
  0x17   :  { %v142_v10 = vsub.f32 0.0, %v126_v9  ;;  %v478_v13 = vld [vmem:[#allocation8 + $0x50] sm:$0xff]  ;;  %v141_v15 = vsub.f32 0.0, %v125_v12  ;;  %v124_v16 = vld [vmem:[#allocation7 + $0x60] sm:$0xff]  ;;  %v123_v17 = vld [vmem:[#allocation7 + $0x58] sm:$0xff]  ;;  %584 = vtanh.f32 %v93_v11 }
  0x18   :  { %486 = vmatpush.msra.mxu1 %v481_v2  ;;  %v174_v14 = vmul.f32 1.442695, %v143_v7  ;;  %v140_v19 = vsub.f32 0.0, %v124_v16  ;;  %v139_v20 = vsub.f32 0.0, %v123_v17  ;;  %v122_v21 = vld [vmem:[#allocation7 + $0x50] sm:$0xff]  ;;  %v477_v22 = vld [vmem:[#allocation8 + $0x48] sm:$0xff] }
  0x19   :  { %v172_v18 = vmul.f32 1.442695, %v142_v10  ;;  %v170_v23 = vmul.f32 1.442695, %v141_v15  ;;  %v138_v24 = vsub.f32 0.0, %v122_v21  ;;  %v92_v25 = vld [vmem:[#allocation5 + $0x60] sm:$0xff] }
  0x1a   :  { %487 = vmatpush.msra.mxu1 %v480_v3  ;;  %586 = vpow2.f32 %v174_v14  ;;  %v168_v26 = vmul.f32 1.442695, %v140_v19  ;;  %v166_v27 = vmul.f32 1.442695, %v139_v20  ;;  %v121_v28 = vld [vmem:[#allocation7 + $0x48] sm:$0xff]  ;;  %v476_v29 = vld [vmem:[#allocation8 + $0x40] sm:$0xff] }
  0x1b   :  { %588 = vpow2.f32 %v172_v18  ;;  %v120_v30 = vld [vmem:[#allocation7 + $0x40] sm:$0xff]  ;;  %v119_v31 = vld [vmem:[#allocation7 + $0x38] sm:$0xff]  ;;  %v856_v32 = vpop.eup %580  ;;  %v118_v34 = vld [vmem:[#allocation7 + $0x30] sm:$0xff]  ;;  %v164_v38 = vmul.f32 1.442695, %v138_v24  ;;  %v137_v39 = vsub.f32 0.0, %v121_v28 }
  0x1c   :  { %488 = vmatpush.msra.mxu1 %v479_v6  ;;  %590 = vpow2.f32 %v170_v23  ;;  %v91_v33 = vld [vmem:[#allocation5 + $0x58] sm:$0xff]  ;;  %v858_v35 = vpop.eup %582  ;;  %v90_v37 = vld [vmem:[#allocation5 + $0x50] sm:$0xff]  ;;  %v136_v41 = vsub.f32 0.0, %v120_v30  ;;  %v135_v42 = vsub.f32 0.0, %v119_v31  ;;  %v134_v45 = vsub.f32 0.0, %v118_v34  ;;  %v864_v48 = vld [vmem:[#allocation7 + $0x28] sm:$0xff] }
  0x1d   :  { %592 = vpow2.f32 %v168_v26  ;;  %v475_v36 = vld [vmem:[#allocation8 + $0x38] sm:$0xff]  ;;  %v860_v40 = vpop.eup %584  ;;  %v474_v44 = vld [vmem:[#allocation8 + $0x30] sm:$0xff]  ;;  %v473_v50 = vld [vmem:[#allocation8 + $0x28] sm:$0xff]  ;;  %v162_v53 = vmul.f32 1.442695, %v137_v39  ;;  %v133_v61 = vsub.f32 0.0, %v864_v48 }
  0x1e   :  { %489 = vmatpush.msra.mxu1 %v478_v13  ;;  %594 = vtanh.f32 %v92_v25  ;;  %v89_v52 = vld [vmem:[#allocation5 + $0x48] sm:$0xff]  ;;  %v472_v55 = vld [vmem:[#allocation8 + $0x20] sm:$0xff]  ;;  %v869_v56 = vmul.f32 1.442695, %v136_v41  ;;  %v871_v57 = vmul.f32 1.442695, %v135_v42 }
  0x1f   :  { %596 = vpow2.f32 %v166_v27  ;;  %v877_v60 = vmul.f32 1.442695, %v134_v45  ;;  %v880_v62 = vld [vmem:[#allocation7 + $0x20] sm:$0xff]  ;;  %v471_v4 = vld [vmem:[#allocation8 + $0x18] sm:$0xff]  ;;  %v470_v12 = vld [vmem:[#allocation8 + $0x10] sm:$0xff] }
  0x20   :  { %490 = vmatpush.msra.mxu1 %v477_v22  ;;  %v587_v43 = vpop.eup %586  ;;  %598 = vtanh.f32 %v91_v33  ;;  %v132_v10 = vsub.f32 0.0, %v880_v62  ;;  %v469_v20 = vld [vmem:[#allocation8 + $0x8] sm:$0xff]  ;;  %v468_v30 = vld [vmem:[#allocation8] sm:$0xff] }
  0x21   :  { %v589_v46 = vpop.eup %588  ;;  %v862_v47 = vadd.f32 1.0, %v587_v43  ;;  %600 = vtanh.f32 %v90_v37  ;;  %v112_v62 = vld [vmem:[#allocation7] sm:$0xff] }
  0x22   :  { %491 = vmatpush.msra.mxu1 %v476_v29  ;;  %v591_v49 = vpop.eup %590  ;;  %v866_v51 = vadd.f32 1.0, %v589_v46  ;;  %602 = vpow2.f32 %v164_v38 }
  0x23   :  { %v593_v54 = vpop.eup %592  ;;  %604 = vrcp.f32 %v862_v47  ;;  %v426_v59 = vand.u32 2147483647, %v862_v47  ;;  %v428_v0 = vand.u32 2147483648, %v862_v47  ;;  %v883_v1 = vadd.f32 1.0, %v591_v49 }
  0x24   :  { %492 = vmatpush.msra.mxu1 %v475_v36  ;;  %v873_v58 = vpop.eup %594  ;;  %606 = vrcp.f32 %v866_v51  ;;  %v885_v2 = vadd.f32 1.0, %v593_v54  ;;  %v411_v5 = vand.u32 2147483647, %v866_v51  ;;  %v413_v6 = vand.u32 2147483648, %v866_v51  ;;  %v929_v36 = vld [vmem:[#allocation2] sm:$0xff] }
  0x25   :  { %v597_v63 = vpop.eup %596  ;;  %608 = vtanh.f32 %v89_v52  ;;  %vm422_vm0 = vweird.f32 %v862_v47  ;;  %v398_v9 = vand.u32 2147483648, %v883_v1  ;;  %vm899_vm1 = vcmp.eq.f32.partialorder %v426_v59, 8.507059e+37 }
  0x26   :  { %493 = vmatpush.msra.mxu1 %v474_v44  ;;  %v887_v3 = vpop.eup %598  ;;  %v891_v7 = vadd.f32 1.0, %v597_v63  ;;  %610 = vpow2.f32 %v162_v53  ;;  %vm407_vm2 = vweird.f32 %v866_v51  ;;  %v396_v14 = vand.u32 2147483647, %v883_v1 }
  0x27   :  { %v893_v8 = vpop.eup %600  ;;  %612 = vrcp.f32 %v883_v1  ;;  %v429_v16 = vor.u32 1.1754944e-38, %v428_v0  ;;  %v381_v17 = vand.u32 2147483647, %v885_v2  ;;  %v383_v18 = vand.u32 2147483648, %v885_v2 }
  0x28   :  { %494 = vmatpush.msra.mxu1 %v473_v50  ;;  %v603_v11 = vpop.eup %602  ;;  %614 = vrcp.f32 %v885_v2  ;;  %vm910_vm3 = vcmp.eq.f32.partialorder %v411_v5, 8.507059e+37  ;;  %v414_v23 = vor.u32 1.1754944e-38, %v413_v6  ;;  %vm392_vm4 = vweird.f32 %v883_v1 }
  0x29   :  { %v605_v15 = vpop.eup %604  ;;  %616 = vrcp.f32 %v891_v7  ;;  %v918_v26 = vor.u32 1.1754944e-38, %v398_v9  ;;  %vm377_vm5 = vweird.f32 %v885_v2  ;;  %v366_v27 = vand.u32 2147483647, %v891_v7 }
  0x2a   :  { %495 = vmatpush.msra.mxu1 %v472_v55  ;;  %v607_v19 = vpop.eup %606  ;;  %v418_v21 = vmul.f32 %v605_v15, %v862_v47  ;;  %vm423_vm6 = vweird.f32 %v605_v15  ;;  %vm922_vm7 = vcmp.eq.f32.partialorder %v396_v14, 8.507059e+37  ;;  %vm362_vm8 = vweird.f32 %v891_v7 }
  0x2b   :  { %v915_v24 = vpop.eup %608  ;;  %v403_v25 = vmul.f32 %v607_v19, %v866_v51  ;;  %v927_v33 = vadd.f32 1.0, %v603_v11  ;;  %vm408_vm9 = vweird.f32 %v607_v19  ;;  %vm931_vm10 = vcmp.eq.f32.partialorder %v381_v17, 8.507059e+37  ;;  %vm943_vm11 = vmor %vm422_vm0, %vm423_vm6 }
  0x2c   :  { %496 = vmatpush.msra.mxu1 %v471_v4  ;;  %v611_v28 = vpop.eup %610  ;;  %v419_v29 = vsub.f32 1.0, %v418_v21  ;;  %v384_v39 = vor.u32 1.1754944e-38, %v383_v18  ;;  %v368_v41 = vand.u32 2147483648, %v891_v7  ;;  %vm948_vm13 = vcmp.eq.f32.partialorder %v366_v27, 8.507059e+37  ;;  %vm956_vm14 = vmor %vm407_vm2, %vm408_vm9 }
  0x2d   :  { %v613_v34 = vpop.eup %612  ;;  %v404_v37 = vsub.f32 1.0, %v403_v25  ;;  %618 = vrcp.f32 %v927_v33  ;;  %v938_v45 = vadd.f32 1.0, %v611_v28  ;;  %v351_v4 = vand.u32 2147483647, %v927_v33 }
  0x2e   :  { %497 = vmatpush.msra.mxu1 %v470_v12  ;;  %v615_v42 = vpop.eup %614  ;;  %v420_v43 = vmul.f32 %v605_v15, %v419_v29  ;;  %v388_v44 = vmul.f32 %v613_v34, %v883_v1  ;;  %vm393_vm12 = vweird.f32 %v613_v34  ;;  %v369_v22 = vor.u32 1.1754944e-38, %v368_v41 }
  0x2f   :  { %v617_v46 = vpop.eup %616  ;;  %v405_v50 = vmul.f32 %v607_v19, %v404_v37  ;;  %v373_v52 = vmul.f32 %v615_v42, %v885_v2  ;;  %vm378_vm15 = vweird.f32 %v615_v42  ;;  %620 = vrcp.f32 %v938_v45  ;;  %vm972_vm2 = vmor %vm392_vm4, %vm393_vm12 }
  0x30   :  { %498 = vmatpush.msra.mxu1 %v469_v20  ;;  %v421_v54 = vadd.f32 %v605_v15, %v420_v43  ;;  %v389_v55 = vsub.f32 1.0, %v388_v44  ;;  %v358_v59 = vmul.f32 %v617_v46, %v891_v7  ;;  %vm363_vm0 = vweird.f32 %v617_v46  ;;  %v88_v44 = vld [vmem:[#allocation5 + $0x40] sm:$0xff] }
  0x31   :  { %v406_v63 = vadd.f32 %v607_v19, %v405_v50  ;;  %v374_v0 = vsub.f32 1.0, %v373_v52  ;;  %vm991_vm4 = vmor %vm362_vm8, %vm363_vm0  ;;  %vm332_vm8 = vweird.f32 %v938_v45  ;;  %622 = vpow2.f32 %v869_v56 }
  0x32   :  { %499 = vmatpush.msra.mxu1 %v468_v30  ;;  %v425_v5 = vsel %vm943_vm11, %v605_v15, %v421_v54  ;;  %v390_v6 = vmul.f32 %v613_v34, %v389_v55  ;;  %v359_v9 = vsub.f32 1.0, %v358_v59  ;;  %v353_v15 = vand.u32 2147483648, %v927_v33  ;;  %v86_v54 = vld [vmem:[#allocation5 + $0x30] sm:$0xff] }
  0x33   :  { %500 = vmatmul.f32.vlgmr.msra.gmra.mxu1 %v929_v36  ;;  %v430_v51 = vsel %vm899_vm1, %v429_v16, %v425_v5  ;;  %v410_v11 = vsel %vm956_vm14, %v607_v19, %v406_v63  ;;  %v375_v14 = vmul.f32 %v615_v42, %v374_v0  ;;  %v619_v17 = vpop.eup %618  ;;  %vm983_vm1 = vmor %vm377_vm5, %vm378_vm15  ;;  %vm999_vm5 = vcmp.eq.f32.partialorder %v351_v4, 8.507059e+37  ;;  %v85_v63 = vld [vmem:[#allocation5 + $0x28] sm:$0xff]  ;;  %v114_v0 = vld [vmem:[#allocation7 + $0x10] sm:$0xff] }
  0x34   :  { %v447_v18 = vmul.f32 %v856_v32, %v430_v51  ;;  %v415_v13 = vsel %vm910_vm3, %v414_v23, %v410_v11  ;;  %v391_v16 = vadd.f32 %v613_v34, %v390_v6  ;;  %v360_v1 = vmul.f32 %v617_v46, %v359_v9  ;;  %v113_v4 = vld [vmem:[#allocation7 + $0x8] sm:$0xff] }
  0x35   :  { %v446_v20 = vmul.f32 %v858_v35, %v415_v13  ;;  %v376_v21 = vadd.f32 %v615_v42, %v375_v14  ;;  %v343_v23 = vmul.f32 %v619_v17, %v927_v33  ;;  %vm347_vm3 = vweird.f32 %v927_v33  ;;  %v621_v29 = vpop.eup %620 }
  0x36   :  { %448 = vmatpush.msra.mxu0 %v447_v18  ;;  %527 = vmatpush.msra.mxu2 %v447_v18  ;;  %v395_v2 = vsel %vm972_vm2, %v613_v34, %v391_v16  ;;  %v361_v25 = vadd.f32 %v617_v46, %v360_v1  ;;  %vm348_vm6 = vweird.f32 %v619_v17  ;;  %v354_v41 = vor.u32 1.1754944e-38, %v353_v15 }
  0x37   :  { %v400_v7 = vsel %vm922_vm7, %v918_v26, %v395_v2  ;;  %v380_v27 = vsel %vm983_vm1, %v615_v42, %v376_v21  ;;  %v344_v28 = vsub.f32 1.0, %v343_v23  ;;  %v328_v43 = vmul.f32 %v621_v29, %v938_v45  ;;  %vm1021_vm7 = vmor %vm347_vm3, %vm348_vm6 }
  0x38   :  { %449 = vmatpush.msra.mxu0 %v446_v20  ;;  %528 = vmatpush.msra.mxu2 %v446_v20  ;;  %v445_v30 = vmul.f32 %v860_v40, %v400_v7  ;;  %v385_v34 = vsel %vm931_vm10, %v384_v39, %v380_v27  ;;  %v365_v37 = vsel %vm991_vm4, %v617_v46, %v361_v25  ;;  %v338_v39 = vand.u32 2147483648, %v938_v45  ;;  %v115_v46 = vld [vmem:[#allocation7 + $0x18] sm:$0xff] }
  0x39   :  { %v444_v31 = vmul.f32 %v873_v58, %v385_v34  ;;  %v370_v26 = vsel %vm948_vm13, %v369_v22, %v365_v37  ;;  %v345_v42 = vmul.f32 %v619_v17, %v344_v28  ;;  %v336_v58 = vand.u32 2147483647, %v938_v45  ;;  %v623_v45 = vpop.eup %622 }
  0x3a   :  { %450 = vmatpush.msra.mxu0 %v445_v30  ;;  %529 = vmatpush.msra.mxu2 %v445_v30  ;;  %v443_v40 = vmul.f32 %v887_v3, %v370_v26  ;;  %v329_v50 = vsub.f32 1.0, %v328_v43  ;;  %vm333_vm9 = vweird.f32 %v621_v29  ;;  %v87_v3 = vld [vmem:[#allocation5 + $0x38] sm:$0xff]  ;;  %624 = vtanh.f32 %v88_v44 }
  0x3b   :  { %v346_v49 = vadd.f32 %v619_v17, %v345_v42  ;;  %v154_v33 = vmul.f32 1.442695, %v133_v61  ;;  %626 = vpow2.f32 %v871_v57  ;;  %v131_v47 = vsub.f32 0.0, %v115_v46  ;;  %vm1039_vm10 = vmor %vm332_vm8, %vm333_vm9 }
  0x3c   :  { %451 = vmatpush.msra.mxu0 %v444_v31  ;;  %530 = vmatpush.msra.mxu2 %v444_v31  ;;  %v330_v53 = vmul.f32 %v621_v29, %v329_v50  ;;  %v339_v48 = vor.u32 1.1754944e-38, %v338_v39  ;;  %628 = vtanh.f32 %v87_v3  ;;  %v152_v61 = vmul.f32 1.442695, %v132_v10 }
  0x3d   :  { %v350_v52 = vsel %vm1021_vm7, %v619_v17, %v346_v49  ;;  %vm337_vm11 = vcmp.eq.f32.partialorder %v336_v58, 8.507059e+37  ;;  %630 = vpow2.f32 %v877_v60  ;;  %v150_v6 = vmul.f32 1.442695, %v131_v47  ;;  %v84_v60 = vld [vmem:[#allocation5 + $0x20] sm:$0xff] }
  0x3e   :  { %452 = vmatpush.msra.mxu0 %v443_v40  ;;  %531 = vmatpush.msra.mxu2 %v443_v40  ;;  %v355_v56 = vsel %vm999_vm5, %v354_v41, %v350_v52  ;;  %v331_v59 = vadd.f32 %v621_v29, %v330_v53  ;;  %632 = vtanh.f32 %v86_v54  ;;  %v1051_v9 = vadd.f32 1.0, %v623_v45 }
  0x3f   :  { %v442_v57 = vmul.f32 %v893_v8, %v355_v56  ;;  %634 = vpow2.f32 %v154_v33  ;;  %v130_v51 = vsub.f32 0.0, %v114_v0  ;;  %v129_v14 = vsub.f32 0.0, %v113_v4 }
  0x40   :  { %v335_v5 = vsel %vm1039_vm10, %v621_v29, %v331_v59  ;;  %v1049_v10 = vpop.eup %624  ;;  %636 = vtanh.f32 %v85_v63  ;;  %v128_v17 = vsub.f32 0.0, %v112_v62  ;;  %v321_v19 = vand.u32 2147483647, %v1051_v9 }
  0x41   :  { %453 = vmatpush.msra.mxu0 %v442_v57  ;;  %532 = vmatpush.msra.mxu2 %v442_v57  ;;  %v340_v8 = vsel %vm337_vm11, %v339_v48, %v335_v5  ;;  %v627_v11 = vpop.eup %626  ;;  %638 = vpow2.f32 %v152_v61  ;;  %v148_v20 = vmul.f32 1.442695, %v130_v51  ;;  %v323_v32 = vand.u32 2147483648, %v1051_v9 }
  0x42   :  { %v441_v12 = vmul.f32 %v915_v24, %v340_v8  ;;  %v1054_v15 = vpop.eup %628  ;;  %640 = vrcp.f32 %v1051_v9  ;;  %v1057_v13 = vadd.f32 1.0, %v627_v11  ;;  %v83_v24 = vld [vmem:[#allocation5 + $0x18] sm:$0xff]  ;;  %v1066_v22 = vmul.f32 1.442695, %v129_v14 }
  0x43   :  { %v631_v18 = vpop.eup %630  ;;  %642 = vtanh.f32 %v84_v60  ;;  %v1073_v35 = vmul.f32 1.442695, %v128_v17  ;;  %vm317_vm12 = vweird.f32 %v1051_v9  ;;  %vm1079_vm13 = vcmp.eq.f32.partialorder %v321_v19, 8.507059e+37 }
  0x44   :  { %454 = vmatpush.msra.mxu0 %v441_v12  ;;  %533 = vmatpush.msra.mxu2 %v441_v12  ;;  %v1059_v16 = vpop.eup %632  ;;  %v1062_v1 = vadd.f32 1.0, %v631_v18  ;;  %644 = vpow2.f32 %v150_v6  ;;  %v306_v2 = vand.u32 2147483647, %v1057_v13  ;;  %v308_v25 = vand.u32 2147483648, %v1057_v13 }
  0x45   :  { %v635_v21 = vpop.eup %634  ;;  %646 = vrcp.f32 %v1057_v13  ;;  %v324_v26 = vor.u32 1.1754944e-38, %v323_v32  ;;  %vm302_vm14 = vweird.f32 %v1057_v13  ;;  %v523_v5 = vand.u32 2147483647, %v929_v36 }
  0x46   :  { %v1068_v23 = vpop.eup %636  ;;  %648 = vrcp.f32 %v1062_v1  ;;  %v291_v27 = vand.u32 2147483647, %v1062_v1  ;;  %v1077_v28 = vadd.f32 1.0, %v635_v21  ;;  %v293_v34 = vand.u32 2147483648, %v1062_v1 }
  0x47   :  { %v639_v7 = vpop.eup %638  ;;  %650 = vtanh.f32 %v83_v24  ;;  %vm1091_vm15 = vcmp.eq.f32.partialorder %v306_v2, 8.507059e+37  ;;  %v309_v44 = vor.u32 1.1754944e-38, %v308_v25  ;;  %vm287_vm0 = vweird.f32 %v1062_v1 }
  0x48   :  { %v641_v29 = vpop.eup %640  ;;  %v1084_v37 = vadd.f32 1.0, %v639_v7  ;;  %652 = vpow2.f32 %v148_v20  ;;  %vm1097_vm1 = vcmp.eq.f32.partialorder %v291_v27, 8.507059e+37  ;;  %v294_v50 = vor.u32 1.1754944e-38, %v293_v34 }
  0x49   :  { %v1086_v41 = vpop.eup %642  ;;  %v313_v31 = vmul.f32 %v641_v29, %v1051_v9  ;;  %654 = vrcp.f32 %v1077_v28  ;;  %vm318_vm2 = vweird.f32 %v641_v29  ;;  %vm272_vm4 = vweird.f32 %v1077_v28 }
  0x4a   :  { %v645_v42 = vpop.eup %644  ;;  %656 = vrcp.f32 %v1084_v37  ;;  %v276_v3 = vand.u32 2147483647, %v1077_v28  ;;  %v278_v54 = vand.u32 2147483648, %v1077_v28  ;;  %vm257_vm3 = vweird.f32 %v1084_v37  ;;  %vm1113_vm5 = vmor %vm317_vm12, %vm318_vm2 }
  0x4b   :  { %v647_v40 = vpop.eup %646  ;;  %v314_v38 = vsub.f32 1.0, %v313_v31  ;;  %v1101_v39 = vadd.f32 1.0, %v645_v42  ;;  %v261_v48 = vand.u32 2147483647, %v1084_v37  ;;  %v263_v63 = vand.u32 2147483648, %v1084_v37 }
  0x4c   :  { %v649_v46 = vpop.eup %648  ;;  %v298_v49 = vmul.f32 %v647_v40, %v1057_v13  ;;  %vm303_vm6 = vweird.f32 %v647_v40  ;;  %vm1121_vm8 = vcmp.eq.f32.partialorder %v276_v3, 8.507059e+37  ;;  %v279_v60 = vor.u32 1.1754944e-38, %v278_v54 }
  0x4d   :  { %v1106_v33 = vpop.eup %650  ;;  %v315_v52 = vmul.f32 %v641_v29, %v314_v38  ;;  %v283_v53 = vmul.f32 %v649_v46, %v1062_v1  ;;  %658 = vrcp.f32 %v1101_v39  ;;  %vm288_vm7 = vweird.f32 %v649_v46  ;;  %vm1131_vm9 = vmor %vm302_vm14, %vm303_vm6 }
  0x4e   :  { %v653_v47 = vpop.eup %652  ;;  %v299_v55 = vsub.f32 1.0, %v298_v49  ;;  %vm1140_vm10 = vmor %vm287_vm0, %vm288_vm7  ;;  %v264_v7 = vor.u32 1.1754944e-38, %v263_v63  ;;  %vm242_vm0 = vweird.f32 %v1101_v39  ;;  %v524_v8 = vadd.f32 1e-10, %v523_v5 }
  0x4f   :  { %v655_v61 = vpop.eup %654  ;;  %v316_v57 = vadd.f32 %v641_v29, %v315_v52  ;;  %v284_v59 = vsub.f32 1.0, %v283_v53  ;;  %v1125_v6 = vadd.f32 1.0, %v653_v47 }
  0x50   :  { %v657_v0 = vpop.eup %656  ;;  %v300_v4 = vmul.f32 %v647_v40, %v299_v55  ;;  %v268_v45 = vmul.f32 %v655_v61, %v1077_v28  ;;  %vm273_vm11 = vweird.f32 %v655_v61 }
  0x51   :  { %v320_v62 = vsel %vm1113_vm5, %v641_v29, %v316_v57  ;;  %v285_v9 = vmul.f32 %v649_v46, %v284_v59  ;;  %v253_v51 = vmul.f32 %v657_v0, %v1084_v37  ;;  %vm258_vm12 = vweird.f32 %v657_v0  ;;  %vm1158_vm14 = vmor %vm272_vm4, %vm273_vm11 }
  0x52   :  { %v325_v11 = vsel %vm1079_vm13, %v324_v26, %v320_v62  ;;  %v301_v12 = vadd.f32 %v647_v40, %v300_v4  ;;  %v269_v17 = vsub.f32 1.0, %v268_v45  ;;  %vm1147_vm13 = vcmp.eq.f32.partialorder %v261_v48, 8.507059e+37 }
  0x53   :  { %v440_v18 = vmul.f32 %v1049_v10, %v325_v11  ;;  %v286_v13 = vadd.f32 %v649_v46, %v285_v9  ;;  %v254_v19 = vsub.f32 1.0, %v253_v51  ;;  %v659_v24 = vpop.eup %658  ;;  %660 = vrcp.f32 %v1125_v6  ;;  %v80_v51 = vld [vmem:[#allocation5] sm:$0xff] }
  0x54   :  { %v305_v20 = vsel %vm1131_vm9, %v647_v40, %v301_v12  ;;  %v270_v21 = vmul.f32 %v655_v61, %v269_v17  ;;  %v238_v28 = vmul.f32 %v659_v24, %v1101_v39  ;;  %vm243_vm2 = vweird.f32 %v659_v24 }
  0x55   :  { %455 = vmatpush.msra.mxu0 %v440_v18  ;;  %534 = vmatpush.msra.mxu2 %v440_v18  ;;  %v310_v1 = vsel %vm1091_vm15, %v309_v44, %v305_v20  ;;  %v290_v10 = vsel %vm1140_vm10, %v649_v46, %v286_v13  ;;  %v255_v25 = vmul.f32 %v657_v0, %v254_v19  ;;  %vm1168_vm15 = vmor %vm257_vm3, %vm258_vm12  ;;  %v246_v37 = vand.u32 2147483647, %v1101_v39  ;;  %v82_v44 = vld [vmem:[#allocation5 + $0x10] sm:$0xff] }
  0x56   :  { %v439_v27 = vmul.f32 %v1054_v15, %v310_v1  ;;  %v295_v29 = vsel %vm1097_vm1, %v294_v50, %v290_v10  ;;  %v271_v30 = vadd.f32 %v655_v61, %v270_v21  ;;  %v248_v15 = vand.u32 2147483648, %v1101_v39  ;;  %vm1190_vm1 = vmor %vm242_vm0, %vm243_vm2 }
  0x57   :  { %v438_v31 = vmul.f32 %v1059_v16, %v295_v29  ;;  %v256_v26 = vadd.f32 %v657_v0, %v255_v25  ;;  %v239_v43 = vsub.f32 1.0, %v238_v28  ;;  %662 = vpow2.f32 %v1066_v22 }
  0x58   :  { %456 = vmatpush.msra.mxu0 %v439_v27  ;;  %535 = vmatpush.msra.mxu2 %v439_v27  ;;  %v275_v42 = vsel %vm1158_vm14, %v655_v61, %v271_v30  ;;  %v249_v52 = vor.u32 1.1754944e-38, %v248_v15  ;;  %664 = vtanh.f32 %v82_v44  ;;  %vm247_vm4 = vcmp.eq.f32.partialorder %v246_v37, 8.507059e+37 }
  0x59   :  { %v280_v40 = vsel %vm1121_vm8, %v279_v60, %v275_v42  ;;  %v260_v16 = vsel %vm1168_vm15, %v657_v0, %v256_v26  ;;  %v661_v38 = vpop.eup %660  ;;  %v240_v49 = vmul.f32 %v659_v24, %v239_v43  ;;  %v233_v54 = vand.u32 2147483648, %v1125_v6 }
  0x5a   :  { %457 = vmatpush.msra.mxu0 %v438_v31  ;;  %536 = vmatpush.msra.mxu2 %v438_v31  ;;  %v437_v58 = vmul.f32 %v1068_v23, %v280_v40  ;;  %v265_v46 = vsel %vm1147_vm13, %v264_v7, %v260_v16  ;;  %v223_v53 = vmul.f32 %v661_v38, %v1125_v6  ;;  %666 = vpow2.f32 %v1073_v35 }
  0x5b   :  { %v436_v50 = vmul.f32 %v1086_v41, %v265_v46  ;;  %v241_v23 = vadd.f32 %v659_v24, %v240_v49  ;;  %vm227_vm3 = vweird.f32 %v1125_v6  ;;  %vm228_vm5 = vweird.f32 %v661_v38 }
  0x5c   :  { %458 = vmatpush.msra.mxu0 %v437_v58  ;;  %537 = vmatpush.msra.mxu2 %v437_v58  ;;  %v224_v22 = vsub.f32 1.0, %v223_v53  ;;  %v231_v41 = vand.u32 2147483647, %v1125_v6  ;;  %vm229_vm6 = vmor %vm227_vm3, %vm228_vm5  ;;  %v234_v61 = vor.u32 1.1754944e-38, %v233_v54 }
  0x5d   :  { %v245_v39 = vsel %vm1190_vm1, %v659_v24, %v241_v23  ;;  %v663_v55 = vpop.eup %662 }
  0x5e   :  { %459 = vmatpush.msra.mxu0 %v436_v50  ;;  %538 = vmatpush.msra.mxu2 %v436_v50  ;;  %v250_v47 = vsel %vm247_vm4, %v249_v52, %v245_v39  ;;  %v225_v56 = vmul.f32 %v661_v38, %v224_v22  ;;  %v665_v57 = vpop.eup %664  ;;  %vm232_vm7 = vcmp.eq.f32.partialorder %v231_v41, 8.507059e+37  ;;  %v177_v59 = vadd.f32 1.0, %v663_v55 }
  0x5f   :  { %v435_v48 = vmul.f32 %v1106_v33, %v250_v47  ;;  %v81_v33 = vld [vmem:[#allocation5 + $0x8] sm:$0xff] }
  0x60   :  { %v226_v35 = vadd.f32 %v661_v38, %v225_v56  ;;  %v667_v63 = vpop.eup %666  ;;  %668 = vrcp.f32 %v177_v59  ;;  %v218_v60 = vand.u32 2147483648, %v177_v59  ;;  %vm212_vm8 = vweird.f32 %v177_v59 }
  0x61   :  { %460 = vmatpush.msra.mxu0 %v435_v48  ;;  %539 = vmatpush.msra.mxu2 %v435_v48  ;;  %v176_v45 = vadd.f32 1.0, %v667_v63  ;;  %v216_v14 = vand.u32 2147483647, %v177_v59 }
  0x62   :  { %v230_v0 = vsel %vm229_vm6, %v661_v38, %v226_v35  ;;  %v219_v13 = vor.u32 1.1754944e-38, %v218_v60 }
  0x63   :  { %v235_v4 = vsel %vm232_vm7, %v234_v61, %v230_v0  ;;  %670 = vrcp.f32 %v176_v45  ;;  %v203_v19 = vand.u32 2147483648, %v176_v45  ;;  %vm197_vm11 = vweird.f32 %v176_v45 }
  0x64   :  { %v434_v6 = vmul.f32 %v665_v57, %v235_v4  ;;  %672 = vtanh.f32 %v81_v33  ;;  %v201_v20 = vand.u32 2147483647, %v176_v45  ;;  %vm217_vm13 = vcmp.eq.f32.partialorder %v216_v14, 8.507059e+37 }
  0x65   :  { %674 = vlog2.f32 %v524_v8  ;;  %v204_v2 = vor.u32 1.1754944e-38, %v203_v19 }
  0x66   :  { %461 = vmatpush.msra.mxu0 %v434_v6  ;;  %540 = vmatpush.msra.mxu2 %v434_v6  ;;  %v669_v62 = vpop.eup %668  ;;  %676 = vtanh.f32 %v80_v51  ;;  %vm202_vm15 = vcmp.eq.f32.partialorder %v201_v20, 8.507059e+37 }
  0x67   :  { %v208_v9 = vmul.f32 %v669_v62, %v177_v59  ;;  %vm213_vm9 = vweird.f32 %v669_v62 }
  0x68   :  { %vm214_vm10 = vmor %vm212_vm8, %vm213_vm9 }
  0x69   :  { %v671_v11 = vpop.eup %670  ;;  %v209_v12 = vsub.f32 1.0, %v208_v9 }
  0x6a   :  { %v193_v17 = vmul.f32 %v671_v11, %v176_v45  ;;  %vm198_vm12 = vweird.f32 %v671_v11  ;;  %v673_v32 = vpop.eup %672 }
  0x6b   :  { %v210_v18 = vmul.f32 %v669_v62, %v209_v12  ;;  %vm199_vm14 = vmor %vm197_vm11, %vm198_vm12  ;;  %v675_v25 = vpop.eup %674 }
  0x6c   :  { %v194_v24 = vsub.f32 1.0, %v193_v17  ;;  %v677_v29 = vpop.eup %676  ;;  %v526_v31 = vmul.f32 0.6931472, %v675_v25 }
  0x6d   :  { %v211_v21 = vadd.f32 %v669_v62, %v210_v18 }
  0x6e   :  { %v195_v1 = vmul.f32 %v671_v11, %v194_v24 }
  0x6f   :  { %v215_v10 = vsel %vm214_vm10, %v669_v62, %v211_v21 }
  0x70   :  { %v220_v7 = vsel %vm217_vm13, %v219_v13, %v215_v10  ;;  %v196_v27 = vadd.f32 %v671_v11, %v195_v1 }
  0x71   :  { %v433_v30 = vmul.f32 %v673_v32, %v220_v7 }
  0x72   :  { %v200_v34 = vsel %vm199_vm14, %v671_v11, %v196_v27 }
  0x73   :  { %462 = vmatpush.msra.mxu0 %v433_v30  ;;  %541 = vmatpush.msra.mxu2 %v433_v30  ;;  %v205_v28 = vsel %vm202_vm15, %v204_v2, %v200_v34 }
  0x74   :  { %v432_v26 = vmul.f32 %v677_v29, %v205_v28 }
  0x76   :  { %463 = vmatpush.msra.mxu0 %v432_v26  ;;  %542 = vmatpush.msra.mxu2 %v432_v26 }
  0x77   :  { %464 = vmatmul.f32.vlgmr.msra.gmra.mxu0 %v929_v36  ;;  %543 = vmatmul.f32.vlgmr.msra.gmra.mxu2 %v526_v31 }
  0xb0   :  { %v501_v15 = vpop.f32.mrf.mxu1 }
  0xb1   :  { %v504_v42 = vsub.f32 0.0, %v501_v15 }
  0xb3   :  { %v505_v43 = vmul.f32 1.442695, %v504_v42 }
  0xb5   :  { %678 = vpow2.f32 %v505_v43 }
  0xbb   :  { %v679_v37 = vpop.eup %678 }
  0xbc   :  { %v507_v44 = vadd.f32 1.0, %v679_v37 }
  0xbe   :  { %680 = vrcp.f32 %v507_v44  ;;  %vm513_vm0 = vweird.f32 %v507_v44  ;;  %v519_v46 = vand.u32 2147483648, %v507_v44  ;;  %v517_v50 = vand.u32 2147483647, %v507_v44 }
  0xc0   :  { %v520_v36 = vor.u32 1.1754944e-38, %v519_v46  ;;  %vm518_vm4 = vcmp.eq.f32.partialorder %v517_v50, 8.507059e+37 }
  0xc4   :  { %v681_v40 = vpop.eup %680 }
  0xc5   :  { %v509_v16 = vmul.f32 %v681_v40, %v507_v44  ;;  %vm514_vm2 = vweird.f32 %v681_v40 }
  0xc6   :  { %vm515_vm1 = vmor %vm513_vm0, %vm514_vm2 }
  0xc7   :  { %v510_v38 = vsub.f32 1.0, %v509_v16 }
  0xc9   :  { %v511_v58 = vmul.f32 %v681_v40, %v510_v38 }
  0xcb   :  { %v512_v49 = vadd.f32 %v681_v40, %v511_v58 }
  0xcd   :  { %v516_v53 = vsel %vm515_vm1, %v681_v40, %v512_v49 }
  0xce   :  { %v521_v23 = vsel %vm518_vm4, %v520_v36, %v516_v53 }
  0xcf   :  { %v550_v22 = vsub.f32 1.0, %v521_v23 }
  0xf4   :  { %v465_v54 = vpop.f32.mrf.mxu0 }
  0xf5   :  { %v549_v39 = vmul.f32 %v521_v23, %v465_v54 }
  0xfa   :  { %v544_v3 = vpop.f32.mrf.mxu2 }
  0xfb   :  { %v547_v52 = vmul.f32 1.442695, %v544_v3 }
  0xfd   :  { %682 = vpow2.f32 %v547_v52 }
 0x103   :  { %v683_v41 = vpop.eup %682 }
 0x104   :  { %v551_v47 = vmul.f32 %v683_v41, %v550_v22 }
 0x106   :  { %v552_v56 = vadd.f32 %v551_v47, %v549_v39 }
 0x108   :  { %553 = vst [vmem:[#allocation10] sm:$0xff] %v552_v56 }
 0x109   :  { %564 = dma.vmem_to_hbm [thread:$0]  %s560_s3, 128, %s562_s11, [#allocation4]  }
 0x10a   :  { %810 = dma.done.wait [#allocation4], 128  }
 0x10b   :  { %811 = vsyncadd [#allocation4], 4294967168 }
 0x10c   :  { %569 = vsyncpa [#allocation3], 1 }
 0x10d   :  { %570 = vsyncpa [#allocation6], 1 }
 0x10e   :  { %571 = vsyncpa [#allocation9], 1 }
 0x10f   :  { %572 = vsyncpa [#allocation4], 1 }

</bundles_post_ra>
